<compile_context>
chip_gen: v7x
topology: tpu7x:2x2x1
jax: 0.10.0
libtpu: 0.0.40
codegen_flags: <defaults>
</compile_context>

<pallas_src>
import jax
import jax.numpy as jnp
from jax.experimental import pallas as pl
from jax.experimental.pallas import tpu as pltpu


def _round_up(a: int, b: int) -> int:
    return (a + b - 1) // b * b


def _weighted_sum_kernel(x_ref, w_ref, o_ref, acc_ref):
    # x_ref:   (1, C_T, HW_T)        input tile
    # w_ref:   (1, Cw_blk, HW_T)     weight tile (Cw_blk == 1 broadcasts over C)
    # o_ref:   (1, 1, C_T)           lane-dense output tile (resident across HW axis)
    # acc_ref: (C_T, 128) float32    VMEM accumulator (resident across HW axis)
    hw_idx = pl.program_id(2)

    @pl.when(hw_idx == 0)
    def _init():
        acc_ref[...] = jnp.zeros_like(acc_ref)

    hw_t = x_ref.shape[2]
    acc = acc_ref[...]
    # Pure VPU inner loop: one 128-lane chunk at a time keeps live vregs small
    # and avoids any per-step cross-lane (XLU) reduction. Static slices at
    # 128-aligned lane offsets are free (no tile-boundary crossing).
    for j in range(hw_t // 128):
        xj = x_ref[0, :, j * 128:(j + 1) * 128].astype(jnp.float32)
        wj = w_ref[0, :, j * 128:(j + 1) * 128].astype(jnp.float32)
        acc = acc + xj * wj
    acc_ref[...] = acc

    @pl.when(hw_idx == pl.num_programs(2) - 1)
    def _finalize():
        # Single cross-lane reduction + one lane-dense store per (n, c-tile).
        s = jnp.sum(acc_ref[...], axis=-1)                    # (C_T,)
        o_ref[...] = s.reshape(1, 1, -1).astype(o_ref.dtype)  # (1, 1, C_T)


def weighted_sum_2d(x, weights, *, c_tile_max=256, hw_tile_max=4096):
    """Pallas implementation of WeightedSum2d.forward((x, weights)).

    x:       (N, C, H, W)
    weights: (N, Cw, H, W) with Cw == 1 or Cw == C
    returns: (N, C, 1, 1)
    """
    N, C, H, W = x.shape
    Nw, Cw, Hw, Ww = weights.shape
    assert Hw == H and Ww == W, (
        "err: h, w of tensors x and weights must be the same.")
    assert Nw == N, "err: batch of x and weights must be the same."
    assert Cw in (1, C), "err: weights channels must be 1 or equal to x channels."
    HW = H * W

    # Tile sizes: multiples of (8, 128), capped so a double-buffered x block
    # stays well inside every generation's scoped-VMEM budget.
    C_TILE = min(_round_up(C, 8), c_tile_max)
    HW_TILE = min(_round_up(HW, 128), hw_tile_max)
    C_pad = _round_up(C, C_TILE)
    HW_pad = _round_up(HW, HW_TILE)

    x_flat = x.reshape(N, C, HW)
    w_flat = weights.reshape(N, Cw, HW)

    # Zero-pad so padded lanes/sublanes contribute exactly 0 to the sum.
    if C_pad != C:
        x_flat = jnp.pad(x_flat, ((0, 0), (0, C_pad - C), (0, 0)))
        if Cw != 1:
            w_flat = jnp.pad(w_flat, ((0, 0), (0, C_pad - C), (0, 0)))
    if HW_pad != HW:
        x_flat = jnp.pad(x_flat, ((0, 0), (0, 0), (0, HW_pad - HW)))
        w_flat = jnp.pad(w_flat, ((0, 0), (0, 0), (0, HW_pad - HW)))

    num_c = C_pad // C_TILE
    num_hw = HW_pad // HW_TILE
    Cw_blk = 1 if Cw == 1 else C_TILE

    if Cw == 1:
        # Independent of the c-tile index: weight re-fetch traffic <= 1/C_TILE of x.
        w_index_map = lambda n, c, k: (n, 0, k)
    else:
        w_index_map = lambda n, c, k: (n, c, k)

    bytes_accessed = (x_flat.size + w_flat.size + N * C_pad) * jnp.dtype(x.dtype).itemsize

    out = pl.pallas_call(
        _weighted_sum_kernel,
        out_shape=jax.ShapeDtypeStruct((N, 1, C_pad), x.dtype),
        grid=(N, num_c, num_hw),
        in_specs=[
            pl.BlockSpec((1, C_TILE, HW_TILE), lambda n, c, k: (n, c, k)),
            pl.BlockSpec((1, Cw_blk, HW_TILE), w_index_map),
        ],
        # Lane-dense output block, constant across the HW (reduction) axis.
        out_specs=pl.BlockSpec((1, 1, C_TILE), lambda n, c, k: (n, 0, c)),
        scratch_shapes=[pltpu.VMEM((C_TILE, 128), jnp.float32)],
        compiler_params=pltpu.CompilerParams(
            dimension_semantics=("parallel", "parallel", "arbitrary")),
        cost_estimate=pl.CostEstimate(
            flops=2 * N * C * HW,
            transcendentals=0,
            bytes_accessed=int(bytes_accessed)),
    )(x_flat, w_flat)

    return out[:, 0, :C].reshape(N, C, 1, 1)


def _reference(x, weights):
    y = x * weights
    y = y.reshape(-1, x.shape[1], x.shape[2] * x.shape[3])
    return jnp.sum(y, axis=2).reshape(-1, x.shape[1], 1, 1)


if __name__ == "__main__":
    key = jax.random.PRNGKey(0)
    kx, kw, kx2, kw2, kw3 = jax.random.split(key, 5)

    # Primary small case (matches the module's expected usage: per-pixel weights).
    N, C, H, W = 2, 4, 16, 16
    x = jax.random.normal(kx, (N, C, H, W), dtype=jnp.float32)
    weights = jax.random.normal(kw, (N, 1, H, W), dtype=jnp.float32)
    out = jax.block_until_ready(weighted_sum_2d(x, weights))
    assert out.shape == (N, C, 1, 1), out.shape
    assert jnp.allclose(out, _reference(x, weights), atol=1e-5, rtol=1e-5)

    # Non-aligned shapes: exercises the zero-padding path (C=5 -> 8, HW=63 -> 128).
    x2 = jax.random.normal(kx2, (1, 5, 9, 7), dtype=jnp.float32)
    w2 = jax.random.normal(kw2, (1, 1, 9, 7), dtype=jnp.float32)
    out2 = jax.block_until_ready(weighted_sum_2d(x2, w2))
    assert jnp.allclose(out2, _reference(x2, w2), atol=1e-5, rtol=1e-5)

    # Per-channel weights path (Cw == C).
    w3 = jax.random.normal(kw3, (N, C, H, W), dtype=jnp.float32)
    out3 = jax.block_until_ready(weighted_sum_2d(x, w3))
    assert jnp.allclose(out3, _reference(x, w3), atol=1e-5, rtol=1e-5)

    print("KERNEL_OK")
</pallas_src>

<mosaic_0001>
module attributes {stable_mosaic.version = 11 : i64} {
  func.func @_weighted_sum_kernel(%arg0: i32, %arg1: i32, %arg2: i32, %arg3: memref<1x8x256xf32, #tpu.memory_space<vmem>>, %arg4: memref<1x1x256xf32, #tpu.memory_space<vmem>>, %arg5: memref<1x1x8xf32, #tpu.memory_space<vmem>>, %arg6: memref<8x128xf32, #tpu.memory_space<vmem>>) attributes {dimension_semantics = [#tpu.dimension_semantics<parallel>, #tpu.dimension_semantics<parallel>, #tpu.dimension_semantics<arbitrary>], iteration_bounds = array<i64: 2, 1, 1>, scalar_prefetch = 0 : i64, scratch_operands = 1 : i64, tpu.core_type = #tpu.core_type<tc>, window_params = [{transform_indices = @transform_0, window_bounds = array<i64: 1, 8, 256>}, {transform_indices = @transform_1, window_bounds = array<i64: 1, 1, 256>}, {transform_indices = @transform_2, window_bounds = array<i64: 1, 1, 8>}]} {
    %c0_i32 = arith.constant 0 : i32
    %0 = arith.cmpi eq, %arg2, %c0_i32 : i32
    %1 = arith.extui %0 : i1 to i32
    %c0_i32_0 = arith.constant 0 : i32
    %2 = arith.cmpi ne, %1, %c0_i32_0 : i32
    scf.if %2 {
      %cst = arith.constant 0.000000e+00 : f32
      %22 = vector.broadcast %cst : f32 to vector<8x128xf32>
      %c0_17 = arith.constant 0 : index
      %c0_18 = arith.constant 0 : index
      %23 = vector.load %arg6[%c0_17, %c0_18] : memref<8x128xf32, #tpu.memory_space<vmem>>, vector<8x128xf32>
      tpu.vector_store %arg6[%c0_17, %c0_18], %22 {strides = array<i32>} : memref<8x128xf32, #tpu.memory_space<vmem>>, vector<8x128xf32>,
    } else {
    }
    %c0 = arith.constant 0 : index
    %c0_1 = arith.constant 0 : index
    %3 = vector.load %arg6[%c0, %c0_1] : memref<8x128xf32, #tpu.memory_space<vmem>>, vector<8x128xf32>
    %c0_2 = arith.constant 0 : index
    %c0_3 = arith.constant 0 : index
    %c0_4 = arith.constant 0 : index
    %4 = vector.load %arg3[%c0_2, %c0_3, %c0_4] : memref<1x8x256xf32, #tpu.memory_space<vmem>>, vector<1x8x128xf32>
    %5 = vector.shape_cast %4 : vector<1x8x128xf32> to vector<8x128xf32>
    %c0_5 = arith.constant 0 : index
    %c0_6 = arith.constant 0 : index
    %c0_7 = arith.constant 0 : index
    %6 = vector.load %arg4[%c0_5, %c0_6, %c0_7] : memref<1x1x256xf32, #tpu.memory_space<vmem>>, vector<1x1x128xf32>
    %7 = vector.shape_cast %6 : vector<1x1x128xf32> to vector<1x128xf32>
    %8 = vector.broadcast %7 : vector<1x128xf32> to vector<8x128xf32>
    %9 = arith.mulf %5, %8 : vector<8x128xf32>
    %10 = arith.addf %3, %9 : vector<8x128xf32>
    %c0_8 = arith.constant 0 : index
    %c0_9 = arith.constant 0 : index
    %c128 = arith.constant 128 : index
    %11 = vector.load %arg3[%c0_8, %c0_9, %c128] : memref<1x8x256xf32, #tpu.memory_space<vmem>>, vector<1x8x128xf32>
    %12 = vector.shape_cast %11 : vector<1x8x128xf32> to vector<8x128xf32>
    %c0_10 = arith.constant 0 : index
    %c0_11 = arith.constant 0 : index
    %c128_12 = arith.constant 128 : index
    %13 = vector.load %arg4[%c0_10, %c0_11, %c128_12] : memref<1x1x256xf32, #tpu.memory_space<vmem>>, vector<1x1x128xf32>
    %14 = vector.shape_cast %13 : vector<1x1x128xf32> to vector<1x128xf32>
    %15 = vector.broadcast %14 : vector<1x128xf32> to vector<8x128xf32>
    %16 = arith.mulf %12, %15 : vector<8x128xf32>
    %17 = arith.addf %10, %16 : vector<8x128xf32>
    %c0_13 = arith.constant 0 : index
    %c0_14 = arith.constant 0 : index
    %18 = vector.load %arg6[%c0_13, %c0_14] : memref<8x128xf32, #tpu.memory_space<vmem>>, vector<8x128xf32>
    tpu.vector_store %arg6[%c0_13, %c0_14], %17 {strides = array<i32>} : memref<8x128xf32, #tpu.memory_space<vmem>>, vector<8x128xf32>,
    %c0_i32_15 = arith.constant 0 : i32
    %19 = arith.cmpi eq, %arg2, %c0_i32_15 : i32
    %20 = arith.extui %19 : i1 to i32
    %c0_i32_16 = arith.constant 0 : i32
    %21 = arith.cmpi ne, %20, %c0_i32_16 : i32
    scf.if %21 {
      %c0_17 = arith.constant 0 : index
      %c0_18 = arith.constant 0 : index
      %22 = vector.load %arg6[%c0_17, %c0_18] : memref<8x128xf32, #tpu.memory_space<vmem>>, vector<8x128xf32>
      %cst = arith.constant dense<0.000000e+00> : vector<8xf32>
      %23 = vector.multi_reduction <add>, %22, %cst [1] : vector<8x128xf32> to vector<8xf32>
      %24 = vector.shape_cast %23 : vector<8xf32> to vector<1x1x8xf32>
      %c0_19 = arith.constant 0 : index
      %c0_20 = arith.constant 0 : index
      %c0_21 = arith.constant 0 : index
      %25 = vector.load %arg5[%c0_19, %c0_20, %c0_21] : memref<1x1x8xf32, #tpu.memory_space<vmem>>, vector<1x1x8xf32>
      tpu.vector_store %arg5[%c0_19, %c0_20, %c0_21], %24 {strides = array<i32>} : memref<1x1x8xf32, #tpu.memory_space<vmem>>, vector<1x1x8xf32>,
    } else {
    }
    return
  }
  func.func @transform_0(%arg0: i32, %arg1: i32, %arg2: i32) -> (i32, i32, i32) {
    %c0_i32 = arith.constant 0 : i32
    return %arg0, %arg1, %arg2 : i32, i32, i32
  }
  func.func @transform_1(%arg0: i32, %arg1: i32, %arg2: i32) -> (i32, i32, i32) {
    %c0_i32 = arith.constant 0 : i32
    %c0_i32_0 = arith.constant 0 : i32
    return %arg0, %c0_i32, %arg2 : i32, i32, i32
  }
  func.func @transform_2(%arg0: i32, %arg1: i32, %arg2: i32) -> (i32, i32, i32) {
    %c0_i32 = arith.constant 0 : i32
    %c0_i32_0 = arith.constant 0 : i32
    return %arg0, %c0_i32, %arg1 : i32, i32, i32
  }
}

</mosaic_0001>

<bundles_post_ra>
// kernel: tpu_custom_call.1
= control target key start
LH: loop header
LB: loop body
LE: loop exit
PB: predicated region body
PF: predicated region fallthrough
CT: control target
= control target key end

     0   :  { %7 = vsyncpa [#allocation4], 0  ;;  %s867_s0 = inlined_call_operand.hbm [shape: f32[2,8,256], index: 0, kind: input, shape index: {}]   ;;  %s868_s1 = inlined_call_operand.hbm [shape: f32[2,1,256], index: 1, kind: input, shape index: {}]   ;;  %s869_s2 = inlined_call_operand.hbm [shape: f32[2,1,8], index: 2, kind: output, shape index: {}]  }
   0x1   :  { %9 = vsyncpa [#allocation4 + $0x1], 0 }
   0x2   :  { %10 = vsyncpa [#allocation7], 0 }
   0x3   :  { %12 = vsyncpa [#allocation7 + $0x1], 0 }
   0x4   :  { %13 = vsyncpa [#allocation5], 0 }
   0x5   :  { %15 = vsyncpa [#allocation5 + $0x1], 0  ;;  %s651_s9 = smov 0   ;;  %s653_s10 = smov 0  }
   0x6   :  { %s655_s11 = smov 0   ;;  %s657_s12 = smov 0  }
   0x7   :  { %s659_s13 = smov 0   ;;  %s661_s14 = smov 0  }
   0x8 LB: > { %s398_s15 = sadd.s32 4294967295, %s631_s14   ;;  %s399_s16 = sadd.s32 4294967294, %s631_s14   ;;  %s631_s14 = sphi %s661_s14, %s21_s14   ;;  %s627_s13 = sphi %s659_s13, %s889_s13   ;;  %s623_s12 = sphi %s657_s12, %s888_s12   ;;  %s619_s11 = sphi %s655_s11, %s887_s11   ;;  %s615_s10 = sphi %s653_s10, %s886_s10   ;;  %s611_s9 = sphi %s651_s9, %s885_s9  }
   0x9   : > { %s40_s17 = sadd.s32 1, %s627_s13  ;;  %s51_s18 = sadd.s32 1, %s619_s11 }
   0xa   : > { %p42_p0 = scmp.ge.s32.totalorder %s40_s17, 2  ;;  %p58_p1 = scmp.ne.s32.totalorder %s619_s11, %s615_s10 }
   0xb   : > { %p59_p2 = scmp.eq.s32.totalorder %s631_s14, 0  ;;  %p64_p3 = scmp.ne.s32.totalorder %s615_s10, %s611_s9 }
   0xc   : > { %s891_s17 = smov (%p42_p0, %s40_s17), 0  ;;  %p65_p5 = scmp.eq.s32.totalorder %s398_s15, 0 }
   0xd   : > { %p692_p4 = por %p59_p2, %p58_p1  ;;  %s44_s20 = ssub.s32 %s627_s13, %s891_s17 }
   0xe   : > { %p118_p6 = scmp.eq.s32.totalorder %s398_s15, 1  ;;  %p49_p7 = scmp.eq.s32.totalorder %s44_s20, 0 }
   0xf   : > { %p698_p8 = por %p65_p5, %p64_p3  ;;  %p124_p10 = scmp.eq.s32.totalorder %s399_s16, 1 }
  0x10   : > { %p702_p9 = por %p118_p6, %p58_p1  ;;  %p435_p13 = scmp.lt.s32.totalorder %s631_s14, 2 }
  0x11   : > { %s873_s21 = scalar_select %p698_p8, 1, 0 }
  0x12   : > { %s874_s22 = scalar_select %p702_p9, 1, 0 }
  0x13   : > { %s707_s23 = scalar_select %p49_p7, %s619_s11, %s51_s18  }
  0x14   : > { %p709_p11 = por %p124_p10, %p64_p3  ;;  %s716_s25 = sand.u32 1, %s619_s11  }
  0x15   : > { %s402_s26 = sshll.u32 %s716_s25, 4  ;;  %s416_s27 = sshll.u32 %s627_s13, 8 }
  0x16   : > { %s875_s24 = scalar_select %p709_p11, 1, 0 }
  0x17   : > { %s723_s30 = scalar_lea.hbm %s867_s0, %s416_s27  ;;  %s148_s3 = scalar_lea.vmem [#allocation3], %s402_s26 }
  0x18   : > { %s160_s4 = sshll.u32 %s148_s3, 4  ;;  %p729_p0 = pnand %p435_p13, %p692_p4  ;;  %s725_s4 = int_to_ptr.vmem [resolvable:$true] %s160_s4 }
  0x19   : > { %s145_s6 = scalar_lea.sflag [#allocation4], %s716_s25  ;;  %s485_s7 = scalar_lea.hbm %s723_s30, 256 }
  0x1a   : > { %p486_p3 = scmp.ne.s32.totalorder %s723_s30, %s485_s7  ;;  %p487_p5 = pneg %p729_p0 }
  0x1b   : > { %s490_s16 = scalar_lea.hbm %s867_s0, 512  ;;  %p491_p4 = scmp.lt.u32.totalorder %s723_s30, %s867_s0 }
  0x1c   : > { %p488_p6 = pnand %p487_p5, %p486_p3  ;;  %p492_p10 = scmp.lt.u32.totalorder %s490_s16, %s485_s7 }
  0x1d   : > { %p494_p12 = scmp.lt.u32.totalorder %s485_s7, %s723_s30 }
  0x1e   : > { %p489_p7 = pneg %p488_p6  ;;  %p493_p13 = por %p492_p10, %p491_p4 }
  0x20   : > { %p495_p1 = por %p494_p12, %p493_p13 }
  0x22   : > { %p496_p2 = pnand %p495_p1, %p489_p7 }
  0x24   : > { %499 = shalt.err (!%p496_p2)
}
  0x25   : > { %s500_s20 = scalar_lea.vmem %s725_s4, 256  ;;  %s633_s26 = smov [#allocation3]  }
  0x26   : > { %p501_p3 = scmp.ne.s32.totalorder %s725_s4, %s500_s20  ;;  %s505_s27 = sshll.u32 %s633_s26, 4  ;;  %s506_s27 = int_to_ptr.vmem [resolvable:$false] %s505_s27 }
  0x27   : > { %s507_s28 = scalar_lea.vmem %s506_s27, 512  ;;  %p508_p9 = scmp.lt.s32.totalorder %s725_s4, %s506_s27 }
  0x28   : > { %p503_p6 = pnand %p501_p3, %p487_p5  ;;  %p509_p4 = scmp.lt.s32.totalorder %s507_s28, %s500_s20 }
  0x2a   : > { %p504_p11 = pneg %p503_p6  ;;  %p510_p10 = por %p509_p4, %p508_p9 }
  0x2c   : > { %p511_p12 = pnand %p510_p10, %p504_p11 }
  0x2e   : > { %514 = shalt.err (!%p511_p12)
}
  0x2f   : > { %427 = dma.hbm_to_vmem [thread:$0]  (!%p729_p0), %s723_s30, 256, %s725_s4, %s145_s6  }
  0x30   : > { %p877_p1 = scmp.lt.s32.totalorder %s631_s14, 3  ;;  %p878_p2 = scmp.ge.s32.totalorder %s631_s14, 1 }
  0x31   : > { %s405_s3 = sshll.u32 %s716_s25, 1  ;;  %s417_s7 = sshll.u32 %s627_s13, 5 }
  0x32   : > { %p765_p7 = pnand %p878_p2, %p877_p1  ;;  %s774_s16 = scalar_lea.hbm %s868_s1, %s417_s7 }
  0x33   : > { %s171_s18 = scalar_lea.vmem [#allocation6], %s405_s3  ;;  %s168_s30 = scalar_lea.sflag [#allocation7], %s716_s25 }
  0x34   : > { %s879_s29 = scalar_select %p765_p7, 1, 0 }
  0x35   : > { %s181_s19 = sshll.u32 %s171_s18, 4  ;;  %s515_s4 = scalar_lea.hbm %s774_s16, 32  ;;  %s182_s19 = int_to_ptr.vmem [resolvable:$true] %s181_s19 }
  0x36   : > { %p516_p9 = scmp.ne.s32.totalorder %s774_s16, %s515_s4  ;;  %s520_s26 = scalar_lea.hbm %s868_s1, 64 }
  0x37   : > { %p521_p3 = scmp.lt.u32.totalorder %s774_s16, %s868_s1  ;;  %p522_p6 = scmp.lt.u32.totalorder %s520_s26, %s515_s4 }
  0x38   : > { %p518_p11 = pnand %p516_p9, %p487_p5  ;;  %p524_p10 = scmp.lt.u32.totalorder %s515_s4, %s774_s16 }
  0x39   : > { %p523_p4 = por %p522_p6, %p521_p3 }
  0x3a   : > { %p519_p13 = pneg %p518_p11 }
  0x3b   : > { %p525_p12 = por %p524_p10, %p523_p4 }
  0x3d   : > { %p526_p1 = pnand %p525_p12, %p519_p13 }
  0x3f   : > { %529 = shalt.err (!%p526_p1)
}
  0x40   : > { %s530_s25 = scalar_lea.vmem %s182_s19, 32  ;;  %s634_s3 = smov [#allocation6]  }
  0x41   : > { %p531_p2 = scmp.ne.s32.totalorder %s182_s19, %s530_s25  ;;  %s535_s7 = sshll.u32 %s634_s3, 4  ;;  %s536_s7 = int_to_ptr.vmem [resolvable:$false] %s535_s7 }
  0x42   : > { %s537_s8 = scalar_lea.vmem %s536_s7, 64  ;;  %p538_p8 = scmp.lt.s32.totalorder %s182_s19, %s536_s7 }
  0x43   : > { %p533_p9 = pnand %p531_p2, %p487_p5  ;;  %p539_p7 = scmp.lt.s32.totalorder %s537_s8, %s530_s25 }
  0x45   : > { %p534_p11 = pneg %p533_p9  ;;  %p540_p3 = por %p539_p7, %p538_p8 }
  0x47   : > { %p541_p6 = pnand %p540_p3, %p534_p11 }
  0x49   : > { %544 = shalt.err (!%p541_p6)
}
  0x4a   : > { %430 = dma.hbm_to_vmem [thread:$0]  (!%p729_p0), %s774_s16, 32, %s182_s19, %s168_s30  }
  0x4b   : > { %p880_p13 = scmp.ne.s32.totalorder %s879_s29, 0 }
  0x4c   : > { %s799_s15 = sand.u32 (!%p880_p13), 1, %s615_s10   ;;  %p881_p5 = scmp.ne.s32.totalorder (!%p880_p13), %s873_s21, 0 }
  0x4d   : > { %190 = sbr.rel (%p880_p13) target bundleno = 252 (0xfc), region = 28  ;;  %s409_s18 = sshll.u32 (!%p880_p13), %s799_s15, 4 }
  0x4e   : > { %s193_s4 = scalar_lea.sflag (!%p880_p13), [#allocation4], %s799_s15  ;;  %s196_s6 = scalar_lea.vmem (!%p880_p13), [#allocation3], %s409_s18 }
  0x54   : > { %598 = dma.done.wait (%p881_p5), %s193_s4, 256  }
  0x55   : > { %600 = vsyncadd (%p881_p5), %s193_s4, 4294967040  ;;  %s410_s5 = sshll.u32 %s799_s15, 1  ;;  %s202_s29 = scalar_lea.sflag [#allocation7], %s799_s15 }
  0x56   : > { %s205_s16 = scalar_lea.vmem [#allocation6], %s410_s5 }
  0x57   : > { %602 = dma.done.wait (%p881_p5), %s202_s29, 32  }
  0x58   : > { %604 = vsyncadd (%p881_p5), %s202_s29, 4294967264  ;;  %v238_v0 = vld [vmem:[%s196_s6] sm:$0xff]  ;;  %v248_v2 = vld [vmem:[%s196_s6 + $0x8] sm:$0xff]  ;;  %v266_v7 = vlaneseq  ;;  %s413_s19 = sshll.u32 %s623_s12, 4  ;;  %s229_s30 = scalar_lea.vmem [#allocation8], %s799_s15  ;;  %vm273_vm0 = vcmask 57344  }
  0x59   : > { %v411_v1 = vld [vmem:[%s205_s16] ss:$0 sm:$0xff]  ;;  %v412_v4 = vld [vmem:[%s205_s16 + $0x1] ss:$0 sm:$0xff]  ;;  %s289_s21 = sshll.u32 %s229_s30, 4  ;;  %s818_s27 = scalar_lea.hbm %s869_s2, %s413_s19  ;;  %s820_s21 = int_to_ptr.vmem [resolvable:$true] %s289_s21 }
  0x5a   : > { %v246_v3 = vmul.f32 %v411_v1, %v238_v0  ;;  %v256_v5 = vmul.f32 %v412_v4, %v248_v2  ;;  %v267_v8 = vand.u32 127, %v266_v7  ;;  %v269_v9 = vshrl.u32 %v266_v7, 7  ;;  %s276_s28 = scalar_lea.sflag [#allocation5], %s799_s15  ;;  %s545_s25 = scalar_lea.vmem %s820_s21, 16 }
  0x5b   : > { %p546_p8 = scmp.ne.s32.totalorder %s820_s21, %s545_s25  ;;  %p882_p0 = scmp.ne.s32.totalorder %s874_s22, 0 }
  0x5c   : > { %v257_v6 = vadd.f32 %v256_v5, %v246_v3  ;;  %v270_v10 = vsub.s32 %v267_v8, %v269_v9  ;;  %s635_s12 = smov [#allocation8]  }
  0x5d   : > { %p547_p7 = pnand %p546_p8, %p882_p0  ;;  %s549_s3 = sshll.u32 %s635_s12, 4  ;;  %s550_s3 = int_to_ptr.vmem [resolvable:$false] %s549_s3 }
  0x5e   : > { %263 = vadd.xlane.f32.xlu0 %v257_v6  ;;  %s551_s7 = scalar_lea.vmem %s550_s3, 32  ;;  %p552_p10 = scmp.lt.s32.totalorder %s820_s21, %s550_s3 }
  0x5f   : > { %p548_p4 = pneg %p547_p7  ;;  %p553_p12 = scmp.lt.s32.totalorder %s551_s7, %s545_s25 }
  0x61   : > { %p554_p1 = por %p553_p12, %p552_p10 }
  0x63   : > { %p555_p2 = pnand %p554_p1, %p548_p4 }
  0xeb   : > { %v264_v11 = vpop.xlane.xlu0 %263 }
  0xec   : > { %v271_v12 = vrot.slane %v264_v11, %v270_v10 }
  0xee   : > { %274 = vst.msk [vmem:[%s229_s30] sm:$0x1] %vm273_vm0, %v271_v12 }
  0xef   : > { %558 = shalt.err (!%p555_p2)
}
  0xf0   : > { %s559_s8 = scalar_lea.hbm %s818_s27, 16  ;;  %s563_s4 = scalar_lea.hbm %s869_s2, 32 }
  0xf1   : > { %p560_p9 = scmp.ne.s32.totalorder %s818_s27, %s559_s8  ;;  %p564_p6 = scmp.lt.u32.totalorder %s818_s27, %s869_s2 }
  0xf2   : > { %p565_p13 = scmp.lt.u32.totalorder %s563_s4, %s559_s8  ;;  %p567_p8 = scmp.lt.u32.totalorder %s559_s8, %s818_s27 }
  0xf3   : > { %p561_p11 = pnand %p560_p9, %p882_p0 }
  0xf4   : > { %p566_p5 = por %p565_p13, %p564_p6 }
  0xf5   : > { %p562_p3 = pneg %p561_p11 }
  0xf6   : > { %p568_p7 = por %p567_p8, %p566_p5 }
  0xf8   : > { %p569_p4 = pnand %p568_p7, %p562_p3 }
  0xfa   : > { %572 = shalt.err (!%p569_p4)
}
  0xfb   : > { %422 = dma.vmem_to_hbm [thread:$0]  (%p882_p0), %s820_s21, 16, %s818_s27, %s276_s28  }
  0xfc PF: > { %s301_s29 = sand.u32 1, %s611_s9   ;;  %p883_p10 = scmp.ne.s32.totalorder %s875_s24, 0 }
  0xfd   : > { %p884_p12 = scmp.ge.s32.totalorder %s631_s14, 2  ;;  %s302_s16 = scalar_lea.sflag [#allocation5], %s301_s29 }
  0xff   : > { %p432_p1 = pnand %p884_p12, %p883_p10 }
 0x101   : > { %606 = dma.done.wait (!%p432_p1), %s302_s16, 16  }
 0x102   : > { %608 = vsyncadd (!%p432_p1), %s302_s16, 4294967280  ;;  %s21_s14 = sadd.s32 1, %s631_s14   ;;  %s885_s9 = smov %s615_s10 }
 0x103   : > { %p18_p2 = scmp.ge.s32.totalorder %s21_s14, 4   ;;  %s886_s10 = smov %s619_s11 }
 0x104   : > { %s887_s11 = smov %s707_s23  ;;  %s888_s12 = smov %s627_s13 }
 0x105   : > { %s889_s13 = smov %s891_s17  ;;  %20 = sbr.rel (!%p18_p2) target bundleno = 8 (0x8), region = 94 }
 0x10c   :  { %306 = vsyncpa [#allocation4], 1 }
 0x10d   :  { %308 = vsyncpa [#allocation4 + $0x1], 1 }
 0x10e   :  { %309 = vsyncpa [#allocation7], 1 }
 0x10f   :  { %311 = vsyncpa [#allocation7 + $0x1], 1 }
 0x110   :  { %312 = vsyncpa [#allocation5], 1 }
 0x111   :  { %314 = vsyncpa [#allocation5 + $0x1], 1 }

</bundles_post_ra>
